<compile_context>
chip_gen: v7x
topology: tpu7x:2x2x1
jax: 0.10.0
libtpu: 0.0.40
codegen_flags: <defaults>
</compile_context>

<pallas_src>
import jax
import jax.numpy as jnp
from jax.experimental import pallas as pl
from jax.experimental.pallas import tpu as pltpu


def _round_up(x, m):
    return (x + m - 1) // m * m


def _lanes(n):
    return _round_up(max(int(n), 1), 128)


def _inverse_model_kernel(f1_ref, f2_ref, w1a_ref, w1b_ref, b1_ref,
                          w2_ref, b2_ref, out_ref):
    """One batch tile of the fused ICM inverse-model MLP.

    f1, f2 : (TB, F)   bf16 (streamed)     w1a, w1b : (F, H)    bf16 (resident)
    b1     : (1, H)    f32  (resident)     w2       : (H, Apad) f32  (resident)
    b2     : (1, Apad) f32  (resident)     out      : (TB, Apad) f32
    """
    # concat([f1, f2], axis=1) @ W1  ==  f1 @ W1[:F] + f2 @ W1[F:]
    h = (jnp.dot(f1_ref[...], w1a_ref[...], preferred_element_type=jnp.float32)
         + jnp.dot(f2_ref[...], w1b_ref[...], preferred_element_type=jnp.float32)
         + b1_ref[...])
    h = jnp.maximum(h, 0.0)                                   # ReLU, f32 VPU
    out = (jnp.dot(h, w2_ref[...], preferred_element_type=jnp.float32)
           + b2_ref[...])
    out_ref[...] = out.astype(out_ref.dtype)                  # lane-dense store


def _choose_tile(B, F, H, A_pad, requested=None):
    """Pick (tile_b, vmem_limit_bytes) from actual VMEM occupancy."""
    # Generation-aware VMEM capacity; fall back to the smallest (v7x 64 MiB).
    try:
        vmem_cap = int(pltpu.get_tpu_info().vmem_capacity_bytes)
    except Exception:
        vmem_cap = 64 * 1024 * 1024
    # Scoped limit handed to the compiler: <= ~48 MiB on v7x, ~96 MiB on
    # v5e/v6e (128 MiB physical) so large F/H tiles are not silently capped.
    vmem_limit = min(vmem_cap * 3 // 4, 100 * 1024 * 1024)

    # Resident (single-buffered) weights, lane/sublane padded.
    resident = (_round_up(2 * F, 16) * _lanes(H) * 2      # w1a + w1b, bf16
                + 8 * _lanes(H) * 4                       # b1
                + _round_up(H, 8) * _lanes(A_pad) * 4     # w2 (lane padded)
                + 8 * _lanes(A_pad) * 4)                  # b2 (lane padded)
    # Streamed bytes per batch row: 2 features x 2 pipeline buffers of
    # lane-padded bf16, plus the double-buffered f32 output block.
    per_row = 2 * 2 * _lanes(F) * 2 + 2 * _lanes(A_pad) * 4
    budget = max((vmem_limit - resident) // 2, 16 * per_row)

    tile_b = budget // per_row
    if requested is not None:
        tile_b = min(tile_b, int(requested))
    tile_b = min(tile_b, _round_up(B, 16))
    # Keep >= 2 balanced tiles for large batches so both v7x TensorCores get
    # work under dimension_semantics=("parallel",). Gated on B >= 512 so each
    # half-tile still sits past the ~85%-of-roofline knee; harmless (one extra
    # ~0.35us grid step) on the single-TC v5e/v6e.
    if B >= 512:
        tile_b = min(tile_b, _round_up(_round_up(B, 16) // 2 + 15, 16))
    tile_b = max(16, (tile_b // 16) * 16)
    return tile_b, vmem_limit


def inverse_model_forward(feature1, feature2, params, *, tile_b=None):
    """Fused Pallas forward pass.

    feature1, feature2 : (B, F) float32
    params             : dict with w1 (2F, H), b1 (H,), w2 (H, A), b2 (A,)
    returns            : (B, A) float32 action logits
    """
    B, F = feature1.shape
    w1, b1, w2, b2 = params["w1"], params["b1"], params["w2"], params["b2"]
    H = w1.shape[1]
    A = w2.shape[1]
    assert w1.shape[0] == 2 * F

    A_pad = _lanes(A)                      # lane-dense output width (>=128)
    tile_b, vmem_limit = _choose_tile(B, F, H, A_pad, requested=tile_b)

    B_pad = _round_up(B, tile_b)
    if B_pad != B:
        pad = ((0, B_pad - B), (0, 0))
        feature1 = jnp.pad(feature1, pad)
        feature2 = jnp.pad(feature2, pad)

    # Streamed tensors in bf16 (halves dominant HBM traffic); f32 accumulate.
    f1 = feature1.astype(jnp.bfloat16)
    f2 = feature2.astype(jnp.bfloat16)
    # W1 split in the wrapper (free one-time XLA slice of a weight) so the
    # kernel never slices a packed bf16 block.
    w1a = w1[:F, :].astype(jnp.bfloat16)
    w1b = w1[F:, :].astype(jnp.bfloat16)
    b1_2d = b1.reshape(1, H).astype(jnp.float32)
    # Lane-pad the tiny second layer to 128 output columns -> unmasked stores.
    w2_p = jnp.pad(w2.astype(jnp.float32), ((0, 0), (0, A_pad - A)))
    b2_p = jnp.pad(b2.reshape(1, A).astype(jnp.float32), ((0, 0), (0, A_pad - A)))

    grid = (B_pad // tile_b,)

    feat_spec = pl.BlockSpec((tile_b, F), lambda i: (i, 0))
    pinned = lambda shape: pl.BlockSpec(shape, lambda i: (0, 0))

    cost = pl.CostEstimate(
        flops=2 * B_pad * (2 * F * H + H * A_pad),
        transcendentals=0,
        bytes_accessed=(2 * B_pad * F * 2                    # bf16 feature reads
                        + 2 * F * H * 2                      # bf16 w1a + w1b
                        + (H + H * A_pad + A_pad) * 4        # f32 b1, w2, b2
                        + B_pad * A_pad * 4),                # f32 output writes
    )

    out = pl.pallas_call(
        _inverse_model_kernel,
        out_shape=jax.ShapeDtypeStruct((B_pad, A_pad), jnp.float32),
        grid=grid,
        in_specs=[
            feat_spec,                # feature1 tile (pipelined)
            feat_spec,                # feature2 tile (pipelined)
            pinned((F, H)),           # w1a (VMEM-resident across tiles)
            pinned((F, H)),           # w1b
            pinned((1, H)),           # b1
            pinned((H, A_pad)),       # w2 (lane padded)
            pinned((1, A_pad)),       # b2 (lane padded)
        ],
        out_specs=pl.BlockSpec((tile_b, A_pad), lambda i: (i, 0)),
        compiler_params=pltpu.CompilerParams(
            dimension_semantics=("parallel",),   # shard batch tiles across TCs
            vmem_limit_bytes=vmem_limit,
        ),
        cost_estimate=cost,
    )(f1, f2, w1a, w1b, b1_2d, w2_p, b2_p)

    return out[:B, :A]


def init_params(key, feature_dim, hidden_dim, action_dim):
    """Deterministic synthetic parameter init (uniform, PyTorch-Linear-ish)."""
    k1, k2, k3, k4 = jax.random.split(key, 4)
    in1 = 2 * feature_dim
    lim1 = 1.0 / jnp.sqrt(in1)
    lim2 = 1.0 / jnp.sqrt(hidden_dim)
    return {
        "w1": jax.random.uniform(k1, (in1, hidden_dim), jnp.float32, -lim1, lim1),
        "b1": jax.random.uniform(k2, (hidden_dim,), jnp.float32, -lim1, lim1),
        "w2": jax.random.uniform(k3, (hidden_dim, action_dim), jnp.float32, -lim2, lim2),
        "b2": jax.random.uniform(k4, (action_dim,), jnp.float32, -lim2, lim2),
    }


def _reference(f1, f2, p):
    """Mirrors the kernel's bf16-input / f32-accumulate numerics."""
    x = jnp.concatenate([f1.astype(jnp.bfloat16), f2.astype(jnp.bfloat16)],
                        axis=1)
    h = jnp.dot(x, p["w1"].astype(jnp.bfloat16),
                preferred_element_type=jnp.float32) + p["b1"]
    h = jnp.maximum(h, 0.0)
    return jnp.dot(h, p["w2"], preferred_element_type=jnp.float32) + p["b2"]


if __name__ == "__main__":
    B, F, H, A = 8, 16, 32, 4   # batch, feature_dim, hidden, action_dim

    key = jax.random.PRNGKey(0)
    kp, kf1, kf2 = jax.random.split(key, 3)
    params = init_params(kp, F, H, A)
    feature1 = jax.random.normal(kf1, (B, F), jnp.float32)
    feature2 = jax.random.normal(kf2, (B, F), jnp.float32)

    out = jax.block_until_ready(inverse_model_forward(feature1, feature2, params))
    assert out.shape == (B, A)

    # Tight check vs a reference using identical bf16-input numerics.
    ref = _reference(feature1, feature2, params)
    assert jnp.allclose(out, ref, atol=1e-4, rtol=1e-4), "mismatch vs bf16 reference"

    # Loose check vs the pure-f32 PyTorch-module semantics.
    x = jnp.concatenate([feature1, feature2], axis=1)
    ref32 = jnp.maximum(x @ params["w1"] + params["b1"], 0.0) @ params["w2"] + params["b2"]
    assert jnp.allclose(out, ref32, atol=5e-2, rtol=5e-2), "mismatch vs f32 reference"

    # Exercise the multi-tile grid + batch-padding path (B not a tile multiple).
    B2 = 200
    kf3, kf4 = jax.random.split(kf2)
    g1 = jax.random.normal(kf3, (B2, F), jnp.float32)
    g2 = jax.random.normal(kf4, (B2, F), jnp.float32)
    out2 = jax.block_until_ready(
        inverse_model_forward(g1, g2, params, tile_b=64))
    assert out2.shape == (B2, A)
    assert jnp.allclose(out2, _reference(g1, g2, params), atol=1e-4, rtol=1e-4), \
        "mismatch vs reference (tiled/padded path)"

    print("KERNEL_OK")
</pallas_src>

<mosaic_0001>
module attributes {stable_mosaic.version = 11 : i64} {
  func.func @_inverse_model_kernel(%arg0: i32, %arg1: memref<16x16xbf16, #tpu.memory_space<vmem>>, %arg2: memref<16x16xbf16, #tpu.memory_space<vmem>>, %arg3: memref<16x32xbf16, #tpu.memory_space<vmem>>, %arg4: memref<16x32xbf16, #tpu.memory_space<vmem>>, %arg5: memref<1x32xf32, #tpu.memory_space<vmem>>, %arg6: memref<32x128xf32, #tpu.memory_space<vmem>>, %arg7: memref<1x128xf32, #tpu.memory_space<vmem>>, %arg8: memref<16x128xf32, #tpu.memory_space<vmem>>) attributes {dimension_semantics = [#tpu.dimension_semantics<parallel>], iteration_bounds = array<i64: 1>, scalar_prefetch = 0 : i64, scratch_operands = 0 : i64, tpu.core_type = #tpu.core_type<tc>, window_params = [{transform_indices = @transform_0, window_bounds = array<i64: 16, 16>}, {transform_indices = @transform_1, window_bounds = array<i64: 16, 16>}, {pipeline_mode = #tpu.pipeline_mode<synchronous>, transform_indices = @transform_2, window_bounds = array<i64: 16, 32>}, {pipeline_mode = #tpu.pipeline_mode<synchronous>, transform_indices = @transform_3, window_bounds = array<i64: 16, 32>}, {pipeline_mode = #tpu.pipeline_mode<synchronous>, transform_indices = @transform_4, window_bounds = array<i64: 1, 32>}, {pipeline_mode = #tpu.pipeline_mode<synchronous>, transform_indices = @transform_5, window_bounds = array<i64: 32, 128>}, {pipeline_mode = #tpu.pipeline_mode<synchronous>, transform_indices = @transform_6, window_bounds = array<i64: 1, 128>}, {transform_indices = @transform_7, window_bounds = array<i64: 16, 128>}]} {
    %c0 = arith.constant 0 : index
    %c0_0 = arith.constant 0 : index
    %0 = vector.load %arg1[%c0, %c0_0] : memref<16x16xbf16, #tpu.memory_space<vmem>>, vector<16x16xbf16>
    %c0_1 = arith.constant 0 : index
    %c0_2 = arith.constant 0 : index
    %1 = vector.load %arg3[%c0_1, %c0_2] : memref<16x32xbf16, #tpu.memory_space<vmem>>, vector<16x32xbf16>
    %cst = arith.constant dense<0.000000e+00> : vector<16x32xf32>
    %2 = tpu.matmul %0, %1, %cst {dimension_numbers = #tpu.dot_dimension_numbers<[1], [0], [0], [1], [0, 0, 1, 1], [], []>} : vector<16x16xbf16>, vector<16x32xbf16>, vector<16x32xf32> -> vector<16x32xf32>
    %c0_3 = arith.constant 0 : index
    %c0_4 = arith.constant 0 : index
    %3 = vector.load %arg2[%c0_3, %c0_4] : memref<16x16xbf16, #tpu.memory_space<vmem>>, vector<16x16xbf16>
    %c0_5 = arith.constant 0 : index
    %c0_6 = arith.constant 0 : index
    %4 = vector.load %arg4[%c0_5, %c0_6] : memref<16x32xbf16, #tpu.memory_space<vmem>>, vector<16x32xbf16>
    %cst_7 = arith.constant dense<0.000000e+00> : vector<16x32xf32>
    %5 = tpu.matmul %3, %4, %cst_7 {dimension_numbers = #tpu.dot_dimension_numbers<[1], [0], [0], [1], [0, 0, 1, 1], [], []>} : vector<16x16xbf16>, vector<16x32xbf16>, vector<16x32xf32> -> vector<16x32xf32>
    %6 = arith.addf %2, %5 : vector<16x32xf32>
    %c0_8 = arith.constant 0 : index
    %c0_9 = arith.constant 0 : index
    %7 = vector.load %arg5[%c0_8, %c0_9] : memref<1x32xf32, #tpu.memory_space<vmem>>, vector<1x32xf32>
    %8 = vector.broadcast %7 : vector<1x32xf32> to vector<16x32xf32>
    %9 = arith.addf %6, %8 : vector<16x32xf32>
    %cst_10 = arith.constant 0.000000e+00 : f32
    %10 = vector.broadcast %cst_10 : f32 to vector<16x32xf32>
    %11 = arith.maximumf %9, %10 : vector<16x32xf32>
    %c0_11 = arith.constant 0 : index
    %c0_12 = arith.constant 0 : index
    %12 = vector.load %arg6[%c0_11, %c0_12] : memref<32x128xf32, #tpu.memory_space<vmem>>, vector<32x128xf32>
    %cst_13 = arith.constant dense<0.000000e+00> : vector<16x128xf32>
    %13 = tpu.matmul %11, %12, %cst_13 {dimension_numbers = #tpu.dot_dimension_numbers<[1], [0], [0], [1], [0, 0, 1, 1], [], []>} : vector<16x32xf32>, vector<32x128xf32>, vector<16x128xf32> -> vector<16x128xf32>
    %c0_14 = arith.constant 0 : index
    %c0_15 = arith.constant 0 : index
    %14 = vector.load %arg7[%c0_14, %c0_15] : memref<1x128xf32, #tpu.memory_space<vmem>>, vector<1x128xf32>
    %15 = vector.broadcast %14 : vector<1x128xf32> to vector<16x128xf32>
    %16 = arith.addf %13, %15 : vector<16x128xf32>
    %c0_16 = arith.constant 0 : index
    %c0_17 = arith.constant 0 : index
    %17 = vector.load %arg8[%c0_16, %c0_17] : memref<16x128xf32, #tpu.memory_space<vmem>>, vector<16x128xf32>
    tpu.vector_store %arg8[%c0_16, %c0_17], %16 {strides = array<i32>} : memref<16x128xf32, #tpu.memory_space<vmem>>, vector<16x128xf32>,
    return
  }
  func.func @transform_0(%arg0: i32) -> (i32, i32) {
    %c0_i32 = arith.constant 0 : i32
    %c0_i32_0 = arith.constant 0 : i32
    return %arg0, %c0_i32 : i32, i32
  }
  func.func @transform_1(%arg0: i32) -> (i32, i32) {
    %c0_i32 = arith.constant 0 : i32
    %c0_i32_0 = arith.constant 0 : i32
    return %arg0, %c0_i32 : i32, i32
  }
  func.func @transform_2(%arg0: i32) -> (i32, i32) {
    %c0_i32 = arith.constant 0 : i32
    %c0_i32_0 = arith.constant 0 : i32
    %c0_i32_1 = arith.constant 0 : i32
    return %c0_i32, %c0_i32_0 : i32, i32
  }
  func.func @transform_3(%arg0: i32) -> (i32, i32) {
    %c0_i32 = arith.constant 0 : i32
    %c0_i32_0 = arith.constant 0 : i32
    %c0_i32_1 = arith.constant 0 : i32
    return %c0_i32, %c0_i32_0 : i32, i32
  }
  func.func @transform_4(%arg0: i32) -> (i32, i32) {
    %c0_i32 = arith.constant 0 : i32
    %c0_i32_0 = arith.constant 0 : i32
    %c0_i32_1 = arith.constant 0 : i32
    return %c0_i32, %c0_i32_0 : i32, i32
  }
  func.func @transform_5(%arg0: i32) -> (i32, i32) {
    %c0_i32 = arith.constant 0 : i32
    %c0_i32_0 = arith.constant 0 : i32
    %c0_i32_1 = arith.constant 0 : i32
    return %c0_i32, %c0_i32_0 : i32, i32
  }
  func.func @transform_6(%arg0: i32) -> (i32, i32) {
    %c0_i32 = arith.constant 0 : i32
    %c0_i32_0 = arith.constant 0 : i32
    %c0_i32_1 = arith.constant 0 : i32
    return %c0_i32, %c0_i32_0 : i32, i32
  }
  func.func @transform_7(%arg0: i32) -> (i32, i32) {
    %c0_i32 = arith.constant 0 : i32
    %c0_i32_0 = arith.constant 0 : i32
    return %arg0, %c0_i32 : i32, i32
  }
}

</mosaic_0001>

<bundles_post_ra>
// kernel: tpu_custom_call.1
= control target key start
LH: loop header
LB: loop body
LE: loop exit
PB: predicated region body
PF: predicated region fallthrough
CT: control target
= control target key end

     0   :  { %12 = vsyncpa [#allocation3], 0  ;;  %s660_s0 = inlined_call_operand.hbm [shape: bf16[16,16], index: 0, kind: input, shape index: {}]   ;;  %s661_s1 = inlined_call_operand.hbm [shape: bf16[16,16], index: 1, kind: input, shape index: {}]   ;;  %s662_s2 = inlined_call_operand.hbm [shape: bf16[16,32], index: 2, kind: input, shape index: {}]   ;;  %s663_s3 = inlined_call_operand.vmem [shape: bf16[16,32], index: 3, kind: input, shape index: {}]   ;;  %s664_s4 = inlined_call_operand.vmem [shape: f32[1,32], index: 4, kind: input, shape index: {}]   ;;  %s665_s5 = inlined_call_operand.hbm [shape: f32[32,128], index: 5, kind: input, shape index: {}]   ;;  %s666_s6 = inlined_call_operand.vmem [shape: f32[1,128], index: 6, kind: input, shape index: {}]   ;;  %s667_s7 = inlined_call_operand.hbm [shape: f32[16,128], index: 7, kind: output, shape index: {}]  }
   0x1   :  { %13 = vsyncpa [#allocation6], 0 }
   0x2   :  { %14 = vsyncpa [#allocation9], 0 }
   0x3   :  { %15 = vsyncpa [#allocation4], 0  ;;  %s511_s24 = smov [#allocation5]   ;;  %s512_s26 = smov [#allocation2]  }
   0x4   :  { %s33_s25 = sshll.u32 %s511_s24, 4  ;;  %s21_s27 = sshll.u32 %s512_s26, 4  ;;  %s34_s25 = int_to_ptr.vmem [resolvable:$true] %s33_s25  ;;  %s562_s27 = int_to_ptr.vmem [resolvable:$true] %s21_s27 }
   0x5   :  { %s393_s30 = scalar_lea.hbm %s661_s1, 128 }
   0x6   :  { %p394_p0 = scmp.ne.s32.totalorder %s661_s1, %s393_s30  ;;  %p397_p1 = scmp.lt.u32.totalorder %s393_s30, %s661_s1 }
   0x8   :  { %p399_p2 = pnand %p397_p1, %p394_p0 }
   0xa   :  { %402 = shalt.err (!%p399_p2)
}
   0xb   :  { %s403_s12 = scalar_lea.vmem %s34_s25, 128  ;;  %p408_p4 = scmp.lt.s32.totalorder %s34_s25, %s34_s25 }
   0xc   :  { %p404_p3 = scmp.ne.s32.totalorder %s34_s25, %s403_s12  ;;  %p409_p5 = scmp.lt.s32.totalorder %s403_s12, %s403_s12 }
   0xe   :  { %p410_p6 = por %p409_p5, %p408_p4 }
  0x10   :  { %p411_p7 = pnand %p410_p6, %p404_p3 }
  0x12   :  { %414 = shalt.err (!%p411_p7)
}
  0x13   :  { %s513_s13 = smov 64   ;;  %s514_s14 = smov 4  }
  0x14   :  { %39 = dma.hbm_to_vmem [thread:$0]  %s661_s1, 128, %s34_s25, [#allocation6], %s513_s13, %s513_s13, %s514_s14  }
  0x15   :  { %s415_s19 = scalar_lea.hbm %s660_s0, 128 }
  0x16   :  { %p416_p8 = scmp.ne.s32.totalorder %s660_s0, %s415_s19  ;;  %p419_p9 = scmp.lt.u32.totalorder %s415_s19, %s660_s0 }
  0x18   :  { %p421_p10 = pnand %p419_p9, %p416_p8 }
  0x1a   :  { %424 = shalt.err (!%p421_p10)
}
  0x1b   :  { %s425_s24 = scalar_lea.vmem %s562_s27, 128  ;;  %p430_p12 = scmp.lt.s32.totalorder %s562_s27, %s562_s27 }
  0x1c   :  { %p426_p11 = scmp.ne.s32.totalorder %s562_s27, %s425_s24  ;;  %p431_p13 = scmp.lt.s32.totalorder %s425_s24, %s425_s24 }
  0x1e   :  { %p432_p0 = por %p431_p13, %p430_p12 }
  0x20   :  { %p433_p1 = pnand %p432_p0, %p426_p11 }
  0x22   :  { %436 = shalt.err (!%p433_p1)
}
  0x23   :  { %27 = dma.hbm_to_vmem [thread:$0]  %s660_s0, 128, %s562_s27, [#allocation3], %s513_s13, %s513_s13, %s514_s14  }
  0x24   :  { %s515_s26 = smov [#allocation7]   ;;  %s516_s29 = smov [#allocation8]  }
  0x25   :  { %s45_s28 = sshll.u32 %s515_s26, 4  ;;  %s61_s30 = sshll.u32 %s516_s29, 4  ;;  %s46_s28 = int_to_ptr.vmem [resolvable:$true] %s45_s28  ;;  %s599_s30 = int_to_ptr.vmem [resolvable:$true] %s61_s30 }
  0x26   :  { %s437_s10 = scalar_lea.hbm %s662_s2, 128 }
  0x27   :  { %p438_p2 = scmp.ne.s32.totalorder %s662_s2, %s437_s10  ;;  %p441_p3 = scmp.lt.u32.totalorder %s437_s10, %s662_s2 }
  0x29   :  { %p443_p4 = pnand %p441_p3, %p438_p2 }
  0x2b   :  { %446 = shalt.err (!%p443_p4)
}
  0x2c   :  { %s447_s0 = scalar_lea.vmem %s46_s28, 128  ;;  %p452_p6 = scmp.lt.s32.totalorder %s46_s28, %s46_s28 }
  0x2d   :  { %p448_p5 = scmp.ne.s32.totalorder %s46_s28, %s447_s0  ;;  %p453_p7 = scmp.lt.s32.totalorder %s447_s0, %s447_s0 }
  0x2f   :  { %p454_p8 = por %p453_p7, %p452_p6 }
  0x31   :  { %p455_p9 = pnand %p454_p8, %p448_p5 }
  0x33   :  { %458 = shalt.err (!%p455_p9)
}
  0x34   :  { %51 = dma.hbm_to_vmem [thread:$0]  %s662_s2, 128, %s46_s28, [#allocation6], %s513_s13, %s513_s13, %s514_s14  }
  0x35   :  { %s459_s20 = scalar_lea.hbm %s665_s5, 512 }
  0x36   :  { %p460_p10 = scmp.ne.s32.totalorder %s665_s5, %s459_s20  ;;  %p463_p11 = scmp.lt.u32.totalorder %s459_s20, %s665_s5 }
  0x38   :  { %p465_p12 = pnand %p463_p11, %p460_p10 }
  0x3a   :  { %468 = shalt.err (!%p465_p12)
}
  0x3b   :  { %s469_s1 = scalar_lea.vmem %s599_s30, 512  ;;  %p474_p0 = scmp.lt.s32.totalorder %s599_s30, %s599_s30 }
  0x3c   :  { %p470_p13 = scmp.ne.s32.totalorder %s599_s30, %s469_s1  ;;  %p475_p1 = scmp.lt.s32.totalorder %s469_s1, %s469_s1 }
  0x3e   :  { %p476_p2 = por %p475_p1, %p474_p0 }
  0x40   :  { %p477_p3 = pnand %p476_p2, %p470_p13 }
  0x42   :  { %480 = shalt.err (!%p477_p3)
}
  0x43   :  { %s517_s2 = smov 128   ;;  %s518_s13 = smov 8  }
  0x44   :  { %67 = dma.hbm_to_vmem [thread:$0]  %s665_s5, 512, %s599_s30, [#allocation9], %s517_s2, %s517_s2, %s518_s13  }
  0x45   :  { %503 = dma.done.wait [#allocation3], 128  }
  0x46   :  { %504 = vsyncadd [#allocation3], 4294967168 }
  0x47   :  { %505 = dma.done.wait [#allocation6], 256  }
  0x48   :  { %506 = vsyncadd [#allocation6], 4294967040 }
  0x49   :  { %507 = dma.done.wait [#allocation9], 512  }
  0x4a   :  { %508 = vsyncadd [#allocation9], 4294966784  ;;  %v519_v0 = vmov 0.0   ;;  %vm520_vm0 = vmmov 0   ;;  %v389_v1 = vld [vmem:[%s663_s3] sm:$0xff]   ;;  %v390_v2 = vld [vmem:[#allocation7] sm:$0xff]  }
  0x4b   :  { %347 = vmatprep.subr.bf16.mxu0 %v519_v0  ;;  %353 = vmatprep.subr.bf16.mxu1 %v519_v0  ;;  %v391_v3 = vld [vmem:[#allocation5] sm:$0xff]   ;;  %vm102_vm1 = vcmask 130048   ;;  %v392_v4 = vld [vmem:[#allocation2] sm:$0xff]   ;;  %v213_v5 = vld [vmem:[#allocation8] sm:$0xff]  ;;  %vm224_vm2 = vcmask 261120  }
  0x4c   :  { %349 = vmatprep.mubr.msk.bf16.mxu0 %vm520_vm0, %v519_v0  ;;  %355 = vmatprep.mubr.msk.bf16.mxu1 %vm520_vm0, %v519_v0  ;;  %v214_v6 = vld [vmem:[#allocation8 + $0x8] sm:$0xff]  ;;  %v215_v8 = vld [vmem:[#allocation8 + $0x10] sm:$0xff]  ;;  %v216_v9 = vld [vmem:[#allocation8 + $0x18] sm:$0xff] }
  0x4d   :  { %348 = vmatpush3.bf16.msra.mxu0 %v389_v1  ;;  %354 = vmatpush3.bf16.msra.mxu1 %v390_v2  ;;  %v370_v7 = vpack.c.bf16 %v214_v6, %v213_v5  ;;  %v374_v10 = vpack.c.bf16 %v216_v9, %v215_v8  ;;  %v333_v13 = vld [vmem:[%s664_s4] ss:$0 sm:$0xff]  ;;  %s521_s4 = smov [#allocation10]  }
  0x4e   :  { %v334_v26 = vld [vmem:[%s666_s6] ss:$0 sm:$0xff]  ;;  %s313_s8 = sshll.u32 %s521_s4, 4  ;;  %s314_s8 = int_to_ptr.vmem [resolvable:$true] %s313_s8 }
  0x4f   :  { %371 = vmatprep.subr.bf16.mxu0 %v370_v7  ;;  %s481_s9 = scalar_lea.vmem %s314_s8, 256  ;;  %p486_p5 = scmp.lt.s32.totalorder %s314_s8, %s314_s8 }
  0x50   :  { %350 = vmatmul.mubr.msk.bf16.vlgmr.msra.gmra.mrb[0].mxu0 %vm102_vm1, %v391_v3  ;;  %356 = vmatmul.mubr.msk.bf16.vlgmr.msra.gmra.mrb[0].mxu1 %vm102_vm1, %v392_v4  ;;  %p482_p4 = scmp.ne.s32.totalorder %s314_s8, %s481_s9  ;;  %p487_p6 = scmp.lt.s32.totalorder %s481_s9, %s481_s9 }
  0x51   :  { %373 = vmatpush3.bf16.msra.mxu0 %v370_v7 }
  0x52   :  { %375 = vmatprep.subr.bf16.mxu0 %v374_v10  ;;  %p488_p7 = por %p487_p6, %p486_p5 }
  0x54   :  { %p489_p8 = pnand %p488_p7, %p482_p4 }
  0x55   :  { %377 = vmatpush3.bf16.msra.mxu0 %v374_v10 }
 0x123   :  { %v140_v11 = vpop.f32.mrb[0].mxu0  ;;  %v195_v12 = vpop.f32.mrb[0].mxu1 }
 0x124   :  { %v351_v14 = vpop.f32.mrb[1].mxu0  ;;  %v196_v15 = vadd.f32 %v195_v12, %v140_v11  ;;  %v357_v16 = vpop.f32.mrb[1].mxu1 }
 0x125   :  { %v143_v17 = vpop.f32.mrb[2].mxu0  ;;  %v198_v18 = vpop.f32.mrb[2].mxu1 }
 0x126   :  { %v352_v19 = vpop.f32.mrb[3].mxu0  ;;  %v209_v20 = vadd.f32 %v333_v13, %v196_v15  ;;  %v199_v21 = vadd.f32 %v198_v18, %v143_v17  ;;  %v358_v22 = vpop.f32.mrb[3].mxu1 }
 0x128   :  { %v211_v23 = vmax.f32 %v209_v20, 0.0  ;;  %v210_v24 = vadd.f32 %v333_v13, %v199_v21 }
 0x12a   :  { %v212_v25 = vmax.f32 %v210_v24, 0.0  ;;  %367 = vmatprep.mubr.msk.f32.mxu0 %vm224_vm2, %v211_v23 }
 0x12c   :  { %368 = vmatmul.mubr.msk.f32.vlgmr.msra.gmra.mrb[4].mxu0 %vm224_vm2, %v212_v25 }
 0x1ff   :  { %v369_v27 = vpop.f32.mrb[4].mxu0 }
 0x200   :  { %v303_v28 = vadd.f32 %v369_v27, %v334_v26  ;;  %v297_v29 = vpop.f32.mrb[5].mxu0 }
 0x201   :  { %v298_v30 = vadd.f32 %v334_v26, %v297_v29 }
 0x202   :  { %307 = vst [vmem:[#allocation10 + $0x8] sm:$0xff] %v303_v28 }
 0x203   :  { %306 = vst [vmem:[#allocation10] sm:$0xff] %v298_v30 }
 0x204   :  { %492 = shalt.err (!%p489_p8)
}
 0x205   :  { %s493_s6 = scalar_lea.hbm %s667_s7, 256 }
 0x206   :  { %p494_p9 = scmp.ne.s32.totalorder %s667_s7, %s493_s6  ;;  %p497_p10 = scmp.lt.u32.totalorder %s493_s6, %s667_s7 }
 0x208   :  { %p499_p11 = pnand %p497_p10, %p494_p9 }
 0x20a   :  { %502 = shalt.err (!%p499_p11)
}
 0x20b   :  { %319 = dma.vmem_to_hbm [thread:$0]  %s314_s8, 256, %s667_s7, [#allocation4], %s517_s2, %s517_s2, %s518_s13  }
 0x20c   :  { %509 = dma.done.wait [#allocation4], 256  }
 0x20d   :  { %510 = vsyncadd [#allocation4], 4294967040 }
 0x20e   :  { %323 = vsyncpa [#allocation3], 1 }
 0x20f   :  { %324 = vsyncpa [#allocation6], 1 }
 0x210   :  { %325 = vsyncpa [#allocation9], 1 }
 0x211   :  { %326 = vsyncpa [#allocation4], 1 }

</bundles_post_ra>
